<compile_context>
chip_gen: v5e
topology: v5e:2x2
jax: 0.10.0
libtpu: 0.0.40
codegen_flags: <defaults>
</compile_context>

<pallas_src>
import functools

import jax
import jax.numpy as jnp
from jax.experimental import pallas as pl
from jax.experimental.pallas import tpu as pltpu


_LANE = 128
_SUBLANE = 8
_MAX_LANE_BLOCK = 2048          # lanes per block  (f32: 8 KiB per row)
_MAX_ROW_BLOCK = 256            # rows per block   -> <= 2 MiB f32 per buffer
_VMEM_LIMIT = 48 * 1024 * 1024  # headroom under v7x's 64 MiB physical VMEM


def _round_up(x, m):
    return (x + m - 1) // m * m


def _pick_block(total, unit, cap):
    """Largest multiple of `unit` that divides `total` and is <= cap.
    If total < unit, return total (full-dim block is always legal)."""
    if total <= unit:
        return total
    best = unit
    b = unit
    while b <= min(total, cap):
        if total % b == 0:
            best = b
        b += unit
    return best


# ---------------------------------------------------------------------------
# Generic residual add kernel: o = fx + x   (fx computed outside in plain JAX)
# ---------------------------------------------------------------------------
def _add_kernel(fx_ref, x_ref, o_ref):
    # Native-dtype add: kernel is HBM-bandwidth bound; upcasting only doubles
    # vreg traffic.  (Mosaic widens bf16 internally on v5e.)
    o_ref[...] = (fx_ref[...] + x_ref[...]).astype(o_ref.dtype)


def residual_add(fx, x):
    """out = fx + x via a lane-dense flattened Pallas add (writes over fx)."""
    assert fx.shape == x.shape, (fx.shape, x.shape)
    out_dtype = jnp.result_type(fx.dtype, x.dtype)
    orig_shape = x.shape
    n = x.size

    lane = min(_MAX_LANE_BLOCK, _round_up(n, _LANE))
    n_pad = _round_up(n, lane)
    rows = n_pad // lane
    if rows > _SUBLANE and rows % _SUBLANE:
        rows = _round_up(rows, _SUBLANE)
        n_pad = rows * lane

    def _prep(a):
        a = a.reshape(-1).astype(out_dtype)
        if n_pad != n:
            a = jnp.pad(a, (0, n_pad - n))
        return a.reshape(rows, lane)

    fa, xa = _prep(fx), _prep(x)

    row_block = _pick_block(rows, _SUBLANE, _MAX_ROW_BLOCK)
    grid = (rows // row_block,)
    spec = pl.BlockSpec((row_block, lane), lambda i: (i, 0))
    itemsize = jnp.dtype(out_dtype).itemsize

    out = pl.pallas_call(
        _add_kernel,
        out_shape=jax.ShapeDtypeStruct((rows, lane), out_dtype),
        grid=grid,
        in_specs=[spec, spec],
        out_specs=spec,
        input_output_aliases={0: 0},                 # sum overwrites fx slab
        compiler_params=pltpu.CompilerParams(
            dimension_semantics=("parallel",),
            vmem_limit_bytes=_VMEM_LIMIT),
        cost_estimate=pl.CostEstimate(
            flops=n_pad, transcendentals=0,
            bytes_accessed=3 * n_pad * itemsize),
    )(fa, xa)

    out = out.reshape(-1)
    if n_pad != n:
        out = out[:n]
    return out.reshape(orig_shape)


# ---------------------------------------------------------------------------
# Fused kernel: o = fn(x, *params) + x   (fn traced inside the kernel)
# ---------------------------------------------------------------------------
def _residual_fused_kernel(*refs, fn):
    # refs = (x_ref, *param_refs, o_ref); blocks are (row_block, lane_block)
    x_ref, *param_refs, o_ref = refs
    x = x_ref[...].astype(jnp.float32)               # lane-dense f32 tile
    params = [p[...].astype(jnp.float32) for p in param_refs]
    y = fn(x, *params)                                # traced in-kernel
    o_ref[...] = (y + x).astype(o_ref.dtype)          # fused residual add


def residual_fused(x_nchw, fn, params):
    """out = fn(x, *params) + x, fully fused in one pallas_call.

    `fn` must act elementwise on a (rows, lanes) f32 tile where each row is
    one (batch, channel) slice of the feature map; each param is per-channel
    (shape (C,), (C,1), (1,C,1,1), ...) or scalar and is delivered to the
    kernel as a (rows, 1) column that broadcasts across lanes.
    """
    B, C, H, W = x_nchw.shape
    HW = H * W
    rows = B * C

    # Lane padding: keep the last dim a multiple of 128 (unmasked vst).
    hw_p = _round_up(HW, _LANE)
    # Row padding: rows must be a multiple of 8 unless it is the full dim.
    rows_p = rows if rows <= _SUBLANE else _round_up(rows, _SUBLANE)

    xr = x_nchw.reshape(rows, HW)
    if (rows_p, hw_p) != (rows, HW):
        xr = jnp.pad(xr, ((0, rows_p - rows), (0, hw_p - HW)))

    def _expand_param(p):
        p = jnp.asarray(p, jnp.float32).reshape(-1)   # (C,) / (1,) / scalar
        if p.shape[0] == 1:
            p = jnp.broadcast_to(p, (C,))
        assert p.shape[0] == C, f"param size {p.shape[0]} != C={C}"
        p = jnp.tile(p, (B,))                         # row r = b*C + c -> p[c]
        if rows_p != rows:
            p = jnp.pad(p, (0, rows_p - rows))
        return p.reshape(rows_p, 1)

    params = tuple(_expand_param(p) for p in params)

    row_block = _pick_block(rows_p, _SUBLANE, _MAX_ROW_BLOCK)
    lane_block = _pick_block(hw_p, _LANE, _MAX_LANE_BLOCK)
    grid = (rows_p // row_block, hw_p // lane_block)

    x_spec = pl.BlockSpec((row_block, lane_block), lambda i, j: (i, j))
    p_spec = pl.BlockSpec((row_block, 1), lambda i, j: (i, 0))
    itemsize = jnp.dtype(x_nchw.dtype).itemsize
    n_pad = rows_p * hw_p

    out = pl.pallas_call(
        functools.partial(_residual_fused_kernel, fn=fn),
        out_shape=jax.ShapeDtypeStruct((rows_p, hw_p), x_nchw.dtype),
        grid=grid,
        in_specs=[x_spec] + [p_spec] * len(params),
        out_specs=x_spec,
        compiler_params=pltpu.CompilerParams(
            dimension_semantics=("parallel", "parallel"),
            vmem_limit_bytes=_VMEM_LIMIT),
        cost_estimate=pl.CostEstimate(
            flops=4 * n_pad, transcendentals=n_pad,
            bytes_accessed=2 * n_pad * itemsize
            + sum(p.size * 4 for p in params)),
    )(xr, *params)

    out = out[:rows, :HW]
    return out.reshape(B, C, H, W)


# ---------------------------------------------------------------------------
# Residual module (Pallas version of minimagen Residual)
# ---------------------------------------------------------------------------
class ResidualPallas:
    """forward(x, **kwargs) = fn(x, **kwargs) + x.

    fuse=True : `fn` is a blockwise JAX callable on a lane-dense f32 tile
                (pointwise / per-channel ops); it is traced inside a single
                fused Pallas kernel together with the residual add, with
                `fused_params` delivered as per-row VMEM columns.
    fuse=False: `fn` is an arbitrary JAX callable (spatial conv, attention,
                ...) evaluated in plain JAX; the residual add is a lane-dense
                Pallas kernel that writes over fn(x)'s buffer in place.
                (When the whole model is jitted, letting XLA fuse the add
                into fn's epilogue is also a fine choice.)
    """

    def __init__(self, fn, *, fuse=False, fused_params=()):
        self.fn = fn
        self.fuse = fuse
        self.fused_params = tuple(fused_params)

    def __call__(self, x, **kwargs):
        if self.fuse:
            return residual_fused(x, self.fn, self.fused_params)
        # TODO(synk): an arbitrary wrapped nn.Module (attention / conv with
        # spatial halos) has no generic in-kernel Pallas equivalent; it runs
        # as plain JAX and only the residual add is a Pallas kernel.
        return residual_add(self.fn(x, **kwargs), x)


# ---------------------------------------------------------------------------
# Self-test
# ---------------------------------------------------------------------------
if __name__ == "__main__":
    key = jax.random.PRNGKey(0)
    k_x, k_s, k_t = jax.random.split(key, 3)

    B, C, H, W = 2, 4, 16, 16
    x = jax.random.normal(k_x, (B, C, H, W), jnp.float32)

    # --- Path 1: fused. fn = per-channel affine + SiLU, traced inside the
    #     kernel together with the residual add.
    scale = 1.0 + 0.1 * jax.random.normal(k_s, (C, 1), jnp.float32)
    shift = 0.1 * jax.random.normal(k_t, (C, 1), jnp.float32)

    def block_fn(xb, s, t):          # xb: (rows, lanes) f32, s/t: (rows, 1)
        return jax.nn.silu(xb * s + t)

    res_fused = ResidualPallas(block_fn, fuse=True, fused_params=(scale, shift))
    out_fused = jax.block_until_ready(res_fused(x))

    xr = x.reshape(B, C, H * W)
    ref_fused = (jax.nn.silu(xr * scale + shift) + xr).reshape(B, C, H, W)
    assert out_fused.shape == (B, C, H, W), out_fused.shape
    assert jnp.allclose(out_fused, ref_fused, atol=1e-4, rtol=1e-4), \
        float(jnp.max(jnp.abs(out_fused - ref_fused)))

    # --- Path 2: generic. fn = 3x3 depthwise conv (needs spatial halos, so
    #     it runs as plain JAX); Pallas does the residual add, aliased onto
    #     the conv output buffer.
    kconv = 0.1 * jax.random.normal(jax.random.PRNGKey(1), (3, 3, 1, C),
                                    jnp.float32)

    def conv_fn(x_nchw):
        xh = jnp.transpose(x_nchw, (0, 2, 3, 1))
        y = jax.lax.conv_general_dilated(
            xh, kconv, (1, 1), ((1, 1), (1, 1)),
            feature_group_count=C,
            dimension_numbers=("NHWC", "HWIO", "NHWC"))
        return jnp.transpose(y, (0, 3, 1, 2))

    res_generic = ResidualPallas(conv_fn, fuse=False)
    out_generic = jax.block_until_ready(res_generic(x))
    ref_generic = conv_fn(x) + x
    assert out_generic.shape == (B, C, H, W), out_generic.shape
    assert jnp.allclose(out_generic, ref_generic, atol=1e-4, rtol=1e-4), \
        float(jnp.max(jnp.abs(out_generic - ref_generic)))

    print("KERNEL_OK")
</pallas_src>

<mosaic_0001>
module attributes {stable_mosaic.version = 11 : i64} {
  func.func @_residual_fused_kernel(%arg0: i32, %arg1: i32, %arg2: memref<8x256xf32, #tpu.memory_space<vmem>>, %arg3: memref<8x1xf32, #tpu.memory_space<vmem>>, %arg4: memref<8x1xf32, #tpu.memory_space<vmem>>, %arg5: memref<8x256xf32, #tpu.memory_space<vmem>>) attributes {dimension_semantics = [#tpu.dimension_semantics<parallel>, #tpu.dimension_semantics<parallel>], iteration_bounds = array<i64: 1, 1>, scalar_prefetch = 0 : i64, scratch_operands = 0 : i64, tpu.core_type = #tpu.core_type<tc>, window_params = [{transform_indices = @transform_0, window_bounds = array<i64: 8, 256>}, {transform_indices = @transform_1, window_bounds = array<i64: 8, 1>}, {transform_indices = @transform_2, window_bounds = array<i64: 8, 1>}, {transform_indices = @transform_3, window_bounds = array<i64: 8, 256>}]} {
    %c0 = arith.constant 0 : index
    %c0_0 = arith.constant 0 : index
    %0 = vector.load %arg2[%c0, %c0_0] : memref<8x256xf32, #tpu.memory_space<vmem>>, vector<8x256xf32>
    %c0_1 = arith.constant 0 : index
    %c0_2 = arith.constant 0 : index
    %1 = vector.load %arg3[%c0_1, %c0_2] : memref<8x1xf32, #tpu.memory_space<vmem>>, vector<8x1xf32>
    %c0_3 = arith.constant 0 : index
    %c0_4 = arith.constant 0 : index
    %2 = vector.load %arg4[%c0_3, %c0_4] : memref<8x1xf32, #tpu.memory_space<vmem>>, vector<8x1xf32>
    %3 = vector.broadcast %1 : vector<8x1xf32> to vector<8x256xf32>
    %4 = arith.mulf %0, %3 : vector<8x256xf32>
    %5 = vector.broadcast %2 : vector<8x1xf32> to vector<8x256xf32>
    %6 = arith.addf %4, %5 : vector<8x256xf32>
    %7 = arith.negf %6 : vector<8x256xf32>
    %8 = math.exp %7 : vector<8x256xf32>
    %cst = arith.constant 1.000000e+00 : f32
    %9 = vector.broadcast %cst : f32 to vector<8x256xf32>
    %10 = arith.addf %9, %8 : vector<8x256xf32>
    %11 = arith.divf %9, %10 : vector<8x256xf32>
    %12 = arith.mulf %6, %11 : vector<8x256xf32>
    %13 = arith.addf %12, %0 : vector<8x256xf32>
    %c0_5 = arith.constant 0 : index
    %c0_6 = arith.constant 0 : index
    %14 = vector.load %arg5[%c0_5, %c0_6] : memref<8x256xf32, #tpu.memory_space<vmem>>, vector<8x256xf32>
    tpu.vector_store %arg5[%c0_5, %c0_6], %13 {strides = array<i32>} : memref<8x256xf32, #tpu.memory_space<vmem>>, vector<8x256xf32>,
    return
  }
  func.func @transform_0(%arg0: i32, %arg1: i32) -> (i32, i32) {
    %c0_i32 = arith.constant 0 : i32
    return %arg0, %arg1 : i32, i32
  }
  func.func @transform_1(%arg0: i32, %arg1: i32) -> (i32, i32) {
    %c0_i32 = arith.constant 0 : i32
    %c0_i32_0 = arith.constant 0 : i32
    return %arg0, %c0_i32 : i32, i32
  }
  func.func @transform_2(%arg0: i32, %arg1: i32) -> (i32, i32) {
    %c0_i32 = arith.constant 0 : i32
    %c0_i32_0 = arith.constant 0 : i32
    return %arg0, %c0_i32 : i32, i32
  }
  func.func @transform_3(%arg0: i32, %arg1: i32) -> (i32, i32) {
    %c0_i32 = arith.constant 0 : i32
    return %arg0, %arg1 : i32, i32
  }
}

</mosaic_0001>

<bundles_post_ra>
// kernel: tpu_custom_call.1
= control target key start
LH: loop header
LB: loop body
LE: loop exit
PB: predicated region body
PF: predicated region fallthrough
CT: control target
= control target key end

     0   :  { %s169_s0 = inlined_call_operand.vmem [shape: f32[8,256], index: 0, kind: input, shape index: {}]   ;;  %s170_s1 = inlined_call_operand.vmem [shape: f32[8,1], index: 1, kind: input, shape index: {}]   ;;  %s171_s2 = inlined_call_operand.vmem [shape: f32[8,1], index: 2, kind: input, shape index: {}]   ;;  %s172_s3 = inlined_call_operand.hbm [shape: f32[8,256], index: 3, kind: output, shape index: {}]  }
   0x1   :  { %v17_v0 = vld [vmem:[%s170_s1] sm:$0xff] }
   0x2   :  { %8 = vsyncpa [#allocation3], 0  ;;  %v132_v1 = vmov 0   ;;  %v18_v2 = vld [vmem:[%s171_s2] sm:$0xff]  ;;  %v16_v5 = vld [vmem:[%s169_s0 + $0x8] sm:$0xff]  ;;  %s84_s21 = sshll.u32 %s172_s3, 4  ;;  %s85_s21 = int_to_ptr.hbm [resolvable:$true] %s84_s21 }
   0x3   :  { %97 = vset.pattern.permute.xlu0 %v132_v1  ;;  %v15_v4 = vld [vmem:[%s169_s0] sm:$0xff]  ;;  %s133_s0 = smov [#allocation2]  }
   0x4   :  { %21 = vperm.xlu0 %97, %v17_v0   ;;  %s82_s1 = sshll.u32 %s133_s0, 4  ;;  %s83_s1 = int_to_ptr.vmem [resolvable:$true] %s82_s1 }
   0xc   :  { %28 = vperm.xlu0 %97, %v18_v2  }
  0x76   :  { %v22_v3 = vpop.permute.xlu0 %21 }
  0x77   :  { %v24_v6 = vmul.f32 %v22_v3, %v15_v4  ;;  %v25_v7 = vmul.f32 %v22_v3, %v16_v5 }
  0x7e   :  { %v29_v8 = vpop.permute.xlu0 %28 }
  0x7f   :  { %v31_v9 = vadd.f32 %v29_v8, %v24_v6  ;;  %v32_v10 = vadd.f32 %v29_v8, %v25_v7 }
  0x81   :  { %v93_v11 = vmul.f32 -1.442695, %v31_v9  ;;  %v94_v12 = vmul.f32 -1.442695, %v32_v10 }
  0x83   :  { %98 = vpow2.f32 %v93_v11 }
  0x84   :  { %100 = vpow2.f32 %v94_v12 }
  0x89   :  { %v99_v13 = vpop.eup %98 }
  0x8a   :  { %v101_v14 = vpop.eup %100  ;;  %v39_v15 = vadd.f32 1.0, %v99_v13 }
  0x8b   :  { %v40_v16 = vadd.f32 1.0, %v101_v14 }
  0x8c   :  { %102 = vrcp.f32 %v39_v15  ;;  %v52_v22 = vand.u32 2147483648, %v39_v15  ;;  %v50_v25 = vand.u32 2147483647, %v39_v15  ;;  %vm46_vm2 = vweird.f32 %v39_v15 }
  0x8d   :  { %104 = vrcp.f32 %v40_v16  ;;  %v67_v26 = vand.u32 2147483648, %v40_v16  ;;  %v65_v28 = vand.u32 2147483647, %v40_v16  ;;  %vm61_vm4 = vweird.f32 %v40_v16 }
  0x8e   :  { %v53_v30 = vor.u32 1.1754944e-38, %v52_v22  ;;  %vm51_vm5 = vcmp.eq.f32.partialorder %v50_v25, 8.507059e+37 }
  0x8f   :  { %v68_v33 = vor.u32 1.1754944e-38, %v67_v26  ;;  %vm66_vm7 = vcmp.eq.f32.partialorder %v65_v28, 8.507059e+37 }
  0x92   :  { %v103_v17 = vpop.eup %102 }
  0x93   :  { %v105_v18 = vpop.eup %104  ;;  %v42_v19 = vmul.f32 %v103_v17, %v39_v15  ;;  %vm47_vm0 = vweird.f32 %v103_v17 }
  0x94   :  { %v57_v20 = vmul.f32 %v105_v18, %v40_v16  ;;  %vm62_vm1 = vweird.f32 %v105_v18  ;;  %vm48_vm3 = vmor %vm46_vm2, %vm47_vm0 }
  0x95   :  { %v43_v21 = vsub.f32 1.0, %v42_v19  ;;  %vm63_vm6 = vmor %vm61_vm4, %vm62_vm1 }
  0x96   :  { %v58_v23 = vsub.f32 1.0, %v57_v20 }
  0x97   :  { %v44_v24 = vmul.f32 %v103_v17, %v43_v21 }
  0x98   :  { %v59_v27 = vmul.f32 %v105_v18, %v58_v23 }
  0x99   :  { %v45_v29 = vadd.f32 %v103_v17, %v44_v24 }
  0x9a   :  { %v60_v31 = vadd.f32 %v105_v18, %v59_v27 }
  0x9b   :  { %v49_v32 = vsel %vm48_vm3, %v103_v17, %v45_v29 }
  0x9c   :  { %v54_v34 = vsel %vm51_vm5, %v53_v30, %v49_v32  ;;  %v64_v35 = vsel %vm63_vm6, %v105_v18, %v60_v31 }
  0x9d   :  { %v69_v36 = vsel %vm66_vm7, %v68_v33, %v64_v35  ;;  %v71_v37 = vmul.f32 %v54_v34, %v31_v9 }
  0x9e   :  { %v72_v38 = vmul.f32 %v69_v36, %v32_v10 }
  0x9f   :  { %v73_v39 = vadd.f32 %v71_v37, %v15_v4 }
  0xa0   :  { %v74_v40 = vadd.f32 %v72_v38, %v16_v5 }
  0xa1   :  { %75 = vst [vmem:[#allocation2] sm:$0xff] %v73_v39 }
  0xa2   :  { %76 = vst [vmem:[#allocation2 + $0x8] sm:$0xff] %v74_v40 }
  0xa3   :  { %87 = dma.vmem_to_hbm [thread:$0]  %s83_s1, 256, %s85_s21, [#allocation3]  }
  0xa4   :  { %130 = dma.done.wait [#allocation3], 256  }
  0xa5   :  { %131 = vsyncadd [#allocation3], 4294967040 }
  0xa6   :  { %92 = vsyncpa [#allocation3], 1 }

</bundles_post_ra>
